<compile_context>
chip_gen: v5e
topology: v5e:2x2
jax: 0.10.0
libtpu: 0.0.40
codegen_flags: <defaults>
</compile_context>

<pallas_src>
import jax
import jax.numpy as jnp
from jax.experimental import pallas as pl
from jax.experimental.pallas import tpu as pltpu


# ----------------------------- Pallas kernel --------------------------------

def _pos_enc_kernel(x_ref, p_ref, o_ref):
    """o = x + P for one lane-dense (B, block_f) tile; P broadcast over batch."""
    # x_ref / o_ref : (B, block_f) VMEM tiles
    # p_ref         : (1, block_f) VMEM tile (shared across the batch)
    o_ref[...] = x_ref[...] + p_ref[...]


# ------------------------------ wrapper --------------------------------------

def _choose_block_f(total_f, target_elems):
    """Largest multiple-of-128 block that divides total_f and fits the target.

    Falls back to the full axis (single full-extent block) if no such divisor
    exists (e.g. S*H not a multiple of 128)."""
    if total_f <= target_elems:
        return total_f
    b = (min(target_elems, total_f) // 128) * 128
    while b >= 128:
        if total_f % b == 0:
            return b
        b -= 128
    return total_f


def positional_encoding_forward(x, p_table, *,
                                force_pallas=False,
                                alias_x=False,
                                target_x_tile_bytes=4 << 20,
                                min_bytes_for_pallas=1 << 18):
    """x: (B, S, H); p_table: (1, max_len, H) f32 sinusoidal table."""
    B, S, H = x.shape
    assert p_table.ndim == 3 and p_table.shape[0] == 1 and p_table.shape[2] == H, \
        "p_table must have shape (1, max_len, num_hiddens)"
    max_len = p_table.shape[1]
    if S > max_len:
        raise ValueError(f"seq_len {S} exceeds positional table max_len {max_len}")

    itemsize = x.dtype.itemsize
    total_bytes = x.size * itemsize
    if (not force_pallas) and total_bytes < min_bytes_for_pallas:
        # Tiny op: pallas_call launch + pipeline overhead dwarfs the work;
        # XLA's fused add is strictly faster at this size.
        return (x + p_table[:, :S, :].astype(x.dtype)).astype(x.dtype)

    # ---- lane-dense flattening: (B, S, H) -> (B, F) with F = S*H ------------
    F = S * H
    x2d = x.reshape(B, F)

    # ---- bytes-driven tile choice -------------------------------------------
    target_elems = max(128, target_x_tile_bytes // (B * itemsize))
    block_f = _choose_block_f(F, target_elems)
    # Guarantee >= 2 parallel grid steps when the problem is big enough so the
    # "parallel" axis actually shards across v7x's two TensorCores.
    if (F // block_f) == 1 and F >= 2048 and F % 256 == 0:
        block_f = F // 2
    n_f = F // block_f

    # ---- P operand: index the original table directly when possible ---------
    if block_f % 128 == 0:
        # Bitcast reshape (no copy); the BlockSpec walks the first F elements
        # of the flat table, i.e. exactly P[0, :S, :] — no wrapper slice copy.
        p2d = p_table.reshape(1, max_len * H)
    else:
        # Ragged last axis (F not a multiple of 128): single full-extent block;
        # slice the needed rows once.
        p2d = p_table[0, :S, :].reshape(1, F)
    if p2d.dtype != x.dtype:
        p2d = p2d.astype(x.dtype)   # halve P traffic when running bf16

    # ---- VMEM budget: x + out double-buffered tiles, double-buffered P tile --
    needed = (2 * B * block_f + 2 * B * block_f + 2 * block_f) * itemsize
    vmem_limit = min(int(needed * 3 // 2) + (2 << 20), 60 << 20)

    cost = pl.CostEstimate(flops=B * F, transcendentals=0,
                           bytes_accessed=(2 * B * F + F) * itemsize)

    out2d = pl.pallas_call(
        _pos_enc_kernel,
        out_shape=jax.ShapeDtypeStruct((B, F), x.dtype),
        grid=(n_f,),
        in_specs=[
            pl.BlockSpec((B, block_f), lambda f: (0, f)),   # activations
            pl.BlockSpec((1, block_f), lambda f: (0, f)),   # shared P tile
        ],
        out_specs=pl.BlockSpec((B, block_f), lambda f: (0, f)),
        compiler_params=pltpu.CompilerParams(
            dimension_semantics=("parallel",),
            vmem_limit_bytes=vmem_limit),
        cost_estimate=cost,
        # Reuse x's buffer for the output when the caller no longer needs x.
        input_output_aliases={0: 0} if alias_x else {},
    )(x2d, p2d)

    return out2d.reshape(B, S, H)


# --------------------------- positional table --------------------------------

def build_positional_table(num_hiddens, max_len=1000):
    """Matches the PyTorch constructor (sin on even lanes, cos on odd lanes)."""
    P = jnp.zeros((1, max_len, num_hiddens), jnp.float32)
    ang = (jnp.arange(max_len, dtype=jnp.float32)[:, None]
           / jnp.power(10000.0,
                       jnp.arange(0, num_hiddens, 2, dtype=jnp.float32)
                       / num_hiddens))
    P = P.at[0, :, 0::2].set(jnp.sin(ang))
    P = P.at[0, :, 1::2].set(jnp.cos(ang))
    return P


# ------------------------- pure-JAX reference (check) ------------------------

def reference_forward(x, p_table):
    return x + p_table[:, :x.shape[1], :]


# ------------------------------------ main -----------------------------------

if __name__ == "__main__":
    MAX_LEN = 1000

    # 1) Small shape implied by the module: (batch, seq, hidden) = (2, 8, 32).
    #    force_pallas=True so the kernel itself is exercised even though the
    #    wrapper would normally route this size to the plain XLA add.
    B, S, H = 2, 8, 32
    p_table = build_positional_table(H, MAX_LEN)
    x = jax.random.normal(jax.random.PRNGKey(0), (B, S, H), dtype=jnp.float32)
    out = jax.block_until_ready(
        positional_encoding_forward(x, p_table, force_pallas=True))
    ref = reference_forward(x, p_table)
    assert out.shape == (B, S, H)
    assert jnp.allclose(out, ref, atol=1e-6, rtol=1e-6), float(
        jnp.max(jnp.abs(out - ref)))

    # 2) Larger lane-dense shape: exercises the multi-step parallel grid.
    B2, S2, H2 = 2, 256, 128
    p2 = build_positional_table(H2, MAX_LEN)
    x2 = jax.random.normal(jax.random.PRNGKey(1), (B2, S2, H2), jnp.float32)
    out2 = jax.block_until_ready(positional_encoding_forward(x2, p2))
    ref2 = reference_forward(x2, p2)
    assert jnp.allclose(out2, ref2, atol=1e-6, rtol=1e-6), float(
        jnp.max(jnp.abs(out2 - ref2)))

    # 3) Hidden size not a multiple of 128: full-extent block + sliced P path.
    B3, S3, H3 = 4, 10, 40
    p3 = build_positional_table(H3, MAX_LEN)
    x3 = jax.random.normal(jax.random.PRNGKey(2), (B3, S3, H3), jnp.float32)
    out3 = jax.block_until_ready(
        positional_encoding_forward(x3, p3, force_pallas=True))
    ref3 = reference_forward(x3, p3)
    assert jnp.allclose(out3, ref3, atol=1e-6, rtol=1e-6), float(
        jnp.max(jnp.abs(out3 - ref3)))

    # 4) bf16 end-to-end (halves HBM traffic); x buffer aliased to the output
    #    (x is dead after this point — reference computed first).
    B4, S4, H4 = 4, 512, 128
    p4 = build_positional_table(H4, MAX_LEN)
    x4 = jax.random.normal(jax.random.PRNGKey(3), (B4, S4, H4),
                           jnp.float32).astype(jnp.bfloat16)
    ref4 = reference_forward(x4.astype(jnp.float32), p4)
    out4 = jax.block_until_ready(
        positional_encoding_forward(x4, p4, alias_x=True))
    assert out4.dtype == jnp.bfloat16
    assert jnp.allclose(out4.astype(jnp.float32), ref4, atol=5e-2, rtol=5e-2), \
        float(jnp.max(jnp.abs(out4.astype(jnp.float32) - ref4)))

    print("KERNEL_OK")
</pallas_src>

<mosaic_0001>
module attributes {stable_mosaic.version = 11 : i64} {
  func.func @_pos_enc_kernel(%arg0: i32, %arg1: memref<2x256xf32, #tpu.memory_space<vmem>>, %arg2: memref<1x256xf32, #tpu.memory_space<vmem>>, %arg3: memref<2x256xf32, #tpu.memory_space<vmem>>) attributes {dimension_semantics = [#tpu.dimension_semantics<parallel>], iteration_bounds = array<i64: 1>, scalar_prefetch = 0 : i64, scratch_operands = 0 : i64, tpu.core_type = #tpu.core_type<tc>, window_params = [{transform_indices = @transform_0, window_bounds = array<i64: 2, 256>}, {transform_indices = @transform_1, window_bounds = array<i64: 1, 256>}, {transform_indices = @transform_2, window_bounds = array<i64: 2, 256>}]} {
    %c0 = arith.constant 0 : index
    %c0_0 = arith.constant 0 : index
    %0 = vector.load %arg1[%c0, %c0_0] : memref<2x256xf32, #tpu.memory_space<vmem>>, vector<2x256xf32>
    %c0_1 = arith.constant 0 : index
    %c0_2 = arith.constant 0 : index
    %1 = vector.load %arg2[%c0_1, %c0_2] : memref<1x256xf32, #tpu.memory_space<vmem>>, vector<1x256xf32>
    %2 = vector.broadcast %1 : vector<1x256xf32> to vector<2x256xf32>
    %3 = arith.addf %0, %2 : vector<2x256xf32>
    %c0_3 = arith.constant 0 : index
    %c0_4 = arith.constant 0 : index
    %4 = vector.load %arg3[%c0_3, %c0_4] : memref<2x256xf32, #tpu.memory_space<vmem>>, vector<2x256xf32>
    tpu.vector_store %arg3[%c0_3, %c0_4], %3 {strides = array<i32>} : memref<2x256xf32, #tpu.memory_space<vmem>>, vector<2x256xf32>,
    return
  }
  func.func @transform_0(%arg0: i32) -> (i32, i32) {
    %c0_i32 = arith.constant 0 : i32
    %c0_i32_0 = arith.constant 0 : i32
    return %c0_i32, %arg0 : i32, i32
  }
  func.func @transform_1(%arg0: i32) -> (i32, i32) {
    %c0_i32 = arith.constant 0 : i32
    %c0_i32_0 = arith.constant 0 : i32
    return %c0_i32, %arg0 : i32, i32
  }
  func.func @transform_2(%arg0: i32) -> (i32, i32) {
    %c0_i32 = arith.constant 0 : i32
    %c0_i32_0 = arith.constant 0 : i32
    return %c0_i32, %arg0 : i32, i32
  }
}

</mosaic_0001>

<bundles_post_ra>
// kernel: tpu_custom_call.1
= control target key start
LH: loop header
LB: loop body
LE: loop exit
PB: predicated region body
PF: predicated region fallthrough
CT: control target
= control target key end

     0   :  { %7 = vsyncpa [#allocation3], 0  ;;  %s177_s0 = inlined_call_operand.hbm [shape: f32[2,256], index: 0, kind: input, shape index: {}]   ;;  %s178_s1 = inlined_call_operand.hbm [shape: f32[1,32000], index: 1, kind: input, shape index: {}]   ;;  %s179_s2 = inlined_call_operand.hbm [shape: f32[2,256], index: 2, kind: output, shape index: {}]  }
   0x1   :  { %8 = vsyncpa [#allocation6], 0 }
   0x2   :  { %9 = vsyncpa [#allocation4], 0  ;;  %s15_s11 = sshll.u32 %s177_s0, 4  ;;  %s150_s12 = smov [#allocation2]   ;;  %s16_s11 = int_to_ptr.hbm [resolvable:$true] %s15_s11 }
   0x3   :  { %s17_s13 = sshll.u32 %s150_s12, 4  ;;  %s26_s16 = sshll.u32 %s178_s1, 4  ;;  %s18_s13 = int_to_ptr.vmem [resolvable:$true] %s17_s13  ;;  %s27_s16 = int_to_ptr.hbm [resolvable:$true] %s26_s16 }
   0x4   :  { %20 = dma.hbm_to_vmem [thread:$0]  %s16_s11, 64, %s18_s13, [#allocation3]  }
   0x5   :  { %s151_s17 = smov [#allocation5]  }
   0x6   :  { %s28_s18 = sshll.u32 %s151_s17, 4  ;;  %s29_s18 = int_to_ptr.vmem [resolvable:$true] %s28_s18 }
   0x7   :  { %31 = dma.hbm_to_vmem [thread:$0]  %s27_s16, 32, %s29_s18, [#allocation6]  }
   0x8   :  { %144 = dma.done.wait [#allocation3], 64  }
   0x9   :  { %145 = vsyncadd [#allocation3], 4294967232 }
   0xa   :  { %146 = dma.done.wait [#allocation6], 32  }
   0xb   :  { %147 = vsyncadd [#allocation6], 4294967264  ;;  %v41_v0 = vld [vmem:[#allocation5] sm:$0x3]  ;;  %vm46_vm0 = vcmask 1041408   ;;  %s152_s0 = smov [#allocation7]  }
   0xc   :  { %v43_v1 = vperm.slane %v41_v0, 0  ;;  %v44_v2 = vperm.slane %v41_v0, 1  ;;  %v40_v3 = vld [vmem:[#allocation2] sm:$0xf]  ;;  %s56_s19 = sshll.u32 %s152_s0, 4  ;;  %s58_s21 = sshll.u32 %s179_s2, 4  ;;  %s57_s19 = int_to_ptr.vmem [resolvable:$true] %s56_s19  ;;  %s59_s21 = int_to_ptr.hbm [resolvable:$true] %s58_s21 }
   0xe   :  { %v45_v4 = vrot.slane %v44_v2, 6 }
  0x10   :  { %v47_v5 = vsel %vm46_vm0, %v43_v1, %v45_v4 }
  0x11   :  { %v49_v6 = vadd.f32 %v47_v5, %v40_v3 }
  0x13   :  { %50 = vst [vmem:[#allocation7] sm:$0xf] %v49_v6 }
  0x14   :  { %61 = dma.vmem_to_hbm [thread:$0]  %s57_s19, 64, %s59_s21, [#allocation4]  }
  0x15   :  { %148 = dma.done.wait [#allocation4], 64  }
  0x16   :  { %149 = vsyncadd [#allocation4], 4294967232 }
  0x17   :  { %66 = vsyncpa [#allocation3], 1 }
  0x18   :  { %67 = vsyncpa [#allocation6], 1 }
  0x19   :  { %68 = vsyncpa [#allocation4], 1 }

</bundles_post_ra>
